<compile_context>
chip_gen: v6e
topology: v6e:2x2x1
jax: 0.10.0
libtpu: 0.0.40
codegen_flags: <defaults>
</compile_context>

<pallas_src>
import functools

import jax
import jax.numpy as jnp
from jax.experimental import pallas as pl
from jax.experimental.pallas import tpu as pltpu

LANES = 128


def _mlp_kernel(x_ref, w1_ref, b1_ref, w2_ref, b2_ref, o_ref):
    # First linear: (TB, in) @ (in, 128) + (1, 128). bf16 MXU inputs, f32 acc.
    h = jnp.dot(
        x_ref[...].astype(jnp.bfloat16),
        w1_ref[...].astype(jnp.bfloat16),
        preferred_element_type=jnp.float32,
    )
    h = h + b1_ref[...]          # f32 elementwise (v5e-friendly)
    h = jax.nn.sigmoid(h)        # logistic -> EUP, not a VALU divide
    # Second linear: (TB, 128) @ (128, out_pad) + (1, out_pad). Lane-dense store.
    y = jnp.dot(
        h.astype(jnp.bfloat16),
        w2_ref[...].astype(jnp.bfloat16),
        preferred_element_type=jnp.float32,
    )
    y = y + b2_ref[...]
    o_ref[...] = y.astype(o_ref.dtype)


def _round_up(n, m):
    return ((n + m - 1) // m) * m


@functools.partial(jax.jit, static_argnames=("block_b",))
def asl_network_forward(x, w1_t, b1, w2_t, b2, *, block_b=128):
    """x: (B, in), w1_t: (in, 128), b1: (1, 128), w2_t: (128, out), b2: (1, out)."""
    batch, in_dim = x.shape
    hidden = w1_t.shape[1]
    out_dim = w2_t.shape[1]

    # Lane-dense output: zero-pad the output feature dim to a multiple of 128.
    out_pad = _round_up(out_dim, LANES)
    if out_pad != out_dim:
        w2_t = jnp.pad(w2_t, ((0, 0), (0, out_pad - out_dim)))
        b2 = jnp.pad(b2, ((0, 0), (0, out_pad - out_dim)))

    # Batch tile: at most block_b rows, at least the f32 sublane minimum (8).
    tb = min(block_b, _round_up(batch, 8))
    b_pad = _round_up(batch, tb)
    if b_pad != batch:
        x = jnp.pad(x, ((0, b_pad - batch), (0, 0)))

    grid = (b_pad // tb,)
    resident = lambda shape: pl.BlockSpec(shape, lambda i: (0, 0))

    out = pl.pallas_call(
        _mlp_kernel,
        out_shape=jax.ShapeDtypeStruct((b_pad, out_pad), jnp.float32),
        grid=grid,
        in_specs=[
            pl.BlockSpec((tb, in_dim), lambda i: (i, 0)),  # x: streamed per batch tile
            resident((in_dim, hidden)),                    # w1: VMEM-resident
            resident((1, hidden)),                         # b1
            resident((hidden, out_pad)),                   # w2 (lane-padded)
            resident((1, out_pad)),                        # b2 (lane-padded)
        ],
        out_specs=pl.BlockSpec((tb, out_pad), lambda i: (i, 0)),
        compiler_params=pltpu.CompilerParams(
            dimension_semantics=("parallel",),  # shard batch tiles across TCs (v7x)
            vmem_limit_bytes=32 << 20,          # safe under v7x's 64 MiB physical VMEM
        ),
    )(x, w1_t, b1, w2_t, b2)

    return out[:batch, :out_dim]


def init_params(key, input_size, hidden, output_size):
    """Deterministic init matching PyTorch nn.Linear's U(-1/sqrt(fan_in), 1/sqrt(fan_in))."""
    k1, k2, k3, k4 = jax.random.split(key, 4)
    bound1 = 1.0 / jnp.sqrt(jnp.float32(input_size))
    bound2 = 1.0 / jnp.sqrt(jnp.float32(hidden))
    # Weights stored pre-transposed relative to PyTorch's (out, in) convention.
    w1_t = jax.random.uniform(k1, (input_size, hidden), jnp.float32, -bound1, bound1)
    b1 = jax.random.uniform(k2, (1, hidden), jnp.float32, -bound1, bound1)
    w2_t = jax.random.uniform(k3, (hidden, output_size), jnp.float32, -bound2, bound2)
    b2 = jax.random.uniform(k4, (1, output_size), jnp.float32, -bound2, bound2)
    return w1_t, b1, w2_t, b2


if __name__ == "__main__":
    INPUT_SIZE = 64   # flattened landmark features
    HIDDEN = 128      # fixed by the module
    OUTPUT_SIZE = 32  # number of ASL classes (small synthetic choice)
    BATCH = 256       # two 128-row batch tiles -> exercises the grid/pipeline

    key = jax.random.PRNGKey(0)
    kx, kp = jax.random.split(key)
    x = jax.random.normal(kx, (BATCH, INPUT_SIZE), jnp.float32)
    w1_t, b1, w2_t, b2 = init_params(kp, INPUT_SIZE, HIDDEN, OUTPUT_SIZE)

    out = asl_network_forward(x, w1_t, b1, w2_t, b2)
    out = jax.block_until_ready(out)
    assert out.shape == (BATCH, OUTPUT_SIZE)

    # Reference 1: same numerics as the kernel (bf16 matmul inputs, f32 accumulation).
    h_ref = jax.nn.sigmoid(
        jnp.dot(x.astype(jnp.bfloat16), w1_t.astype(jnp.bfloat16),
                preferred_element_type=jnp.float32) + b1)
    ref_bf16 = jnp.dot(h_ref.astype(jnp.bfloat16), w2_t.astype(jnp.bfloat16),
                       preferred_element_type=jnp.float32) + b2
    assert jnp.allclose(out, ref_bf16, atol=2e-3, rtol=2e-3), "mismatch vs bf16 reference"

    # Reference 2: full-f32 PyTorch-equivalent forward (looser tol: bf16 matmul inputs).
    ref_f32 = jax.nn.sigmoid(x @ w1_t + b1) @ w2_t + b2
    assert jnp.allclose(out, ref_f32, atol=5e-2, rtol=5e-2), "mismatch vs f32 reference"

    print("KERNEL_OK")
</pallas_src>

<mosaic_0001>
module attributes {stable_mosaic.version = 11 : i64} {
  func.func @_mlp_kernel(%arg0: i32, %arg1: memref<128x64xf32, #tpu.memory_space<vmem>>, %arg2: memref<64x128xf32, #tpu.memory_space<vmem>>, %arg3: memref<1x128xf32, #tpu.memory_space<vmem>>, %arg4: memref<128x128xf32, #tpu.memory_space<vmem>>, %arg5: memref<1x128xf32, #tpu.memory_space<vmem>>, %arg6: memref<128x128xf32, #tpu.memory_space<vmem>>) attributes {dimension_semantics = [#tpu.dimension_semantics<parallel>], iteration_bounds = array<i64: 2>, scalar_prefetch = 0 : i64, scratch_operands = 0 : i64, tpu.core_type = #tpu.core_type<tc>, window_params = [{transform_indices = @transform_0, window_bounds = array<i64: 128, 64>}, {pipeline_mode = #tpu.pipeline_mode<synchronous>, transform_indices = @transform_1, window_bounds = array<i64: 64, 128>}, {pipeline_mode = #tpu.pipeline_mode<synchronous>, transform_indices = @transform_2, window_bounds = array<i64: 1, 128>}, {pipeline_mode = #tpu.pipeline_mode<synchronous>, transform_indices = @transform_3, window_bounds = array<i64: 128, 128>}, {pipeline_mode = #tpu.pipeline_mode<synchronous>, transform_indices = @transform_4, window_bounds = array<i64: 1, 128>}, {transform_indices = @transform_5, window_bounds = array<i64: 128, 128>}]} {
    %c0 = arith.constant 0 : index
    %c0_0 = arith.constant 0 : index
    %0 = vector.load %arg1[%c0, %c0_0] : memref<128x64xf32, #tpu.memory_space<vmem>>, vector<128x64xf32>
    %1 = arith.truncf %0 : vector<128x64xf32> to vector<128x64xbf16>
    %c0_1 = arith.constant 0 : index
    %c0_2 = arith.constant 0 : index
    %2 = vector.load %arg2[%c0_1, %c0_2] : memref<64x128xf32, #tpu.memory_space<vmem>>, vector<64x128xf32>
    %3 = arith.truncf %2 : vector<64x128xf32> to vector<64x128xbf16>
    %cst = arith.constant dense<0.000000e+00> : vector<128x128xf32>
    %4 = tpu.matmul %1, %3, %cst {dimension_numbers = #tpu.dot_dimension_numbers<[1], [0], [0], [1], [0, 0, 1, 1], [], []>} : vector<128x64xbf16>, vector<64x128xbf16>, vector<128x128xf32> -> vector<128x128xf32>
    %c0_3 = arith.constant 0 : index
    %c0_4 = arith.constant 0 : index
    %5 = vector.load %arg3[%c0_3, %c0_4] : memref<1x128xf32, #tpu.memory_space<vmem>>, vector<1x128xf32>
    %6 = vector.broadcast %5 : vector<1x128xf32> to vector<128x128xf32>
    %7 = arith.addf %4, %6 : vector<128x128xf32>
    %8 = arith.negf %7 : vector<128x128xf32>
    %9 = math.exp %8 : vector<128x128xf32>
    %cst_5 = arith.constant 1.000000e+00 : f32
    %10 = vector.broadcast %cst_5 : f32 to vector<128x128xf32>
    %11 = arith.addf %10, %9 : vector<128x128xf32>
    %12 = arith.divf %10, %11 : vector<128x128xf32>
    %13 = arith.truncf %12 : vector<128x128xf32> to vector<128x128xbf16>
    %c0_6 = arith.constant 0 : index
    %c0_7 = arith.constant 0 : index
    %14 = vector.load %arg4[%c0_6, %c0_7] : memref<128x128xf32, #tpu.memory_space<vmem>>, vector<128x128xf32>
    %15 = arith.truncf %14 : vector<128x128xf32> to vector<128x128xbf16>
    %cst_8 = arith.constant dense<0.000000e+00> : vector<128x128xf32>
    %16 = tpu.matmul %13, %15, %cst_8 {dimension_numbers = #tpu.dot_dimension_numbers<[1], [0], [0], [1], [0, 0, 1, 1], [], []>} : vector<128x128xbf16>, vector<128x128xbf16>, vector<128x128xf32> -> vector<128x128xf32>
    %c0_9 = arith.constant 0 : index
    %c0_10 = arith.constant 0 : index
    %17 = vector.load %arg5[%c0_9, %c0_10] : memref<1x128xf32, #tpu.memory_space<vmem>>, vector<1x128xf32>
    %18 = vector.broadcast %17 : vector<1x128xf32> to vector<128x128xf32>
    %19 = arith.addf %16, %18 : vector<128x128xf32>
    %c0_11 = arith.constant 0 : index
    %c0_12 = arith.constant 0 : index
    %20 = vector.load %arg6[%c0_11, %c0_12] : memref<128x128xf32, #tpu.memory_space<vmem>>, vector<128x128xf32>
    tpu.vector_store %arg6[%c0_11, %c0_12], %19 {strides = array<i32>} : memref<128x128xf32, #tpu.memory_space<vmem>>, vector<128x128xf32>,
    return
  }
  func.func @transform_0(%arg0: i32) -> (i32, i32) {
    %c0_i32 = arith.constant 0 : i32
    %c0_i32_0 = arith.constant 0 : i32
    return %arg0, %c0_i32 : i32, i32
  }
  func.func @transform_1(%arg0: i32) -> (i32, i32) {
    %c0_i32 = arith.constant 0 : i32
    %c0_i32_0 = arith.constant 0 : i32
    %c0_i32_1 = arith.constant 0 : i32
    return %c0_i32, %c0_i32_0 : i32, i32
  }
  func.func @transform_2(%arg0: i32) -> (i32, i32) {
    %c0_i32 = arith.constant 0 : i32
    %c0_i32_0 = arith.constant 0 : i32
    %c0_i32_1 = arith.constant 0 : i32
    return %c0_i32, %c0_i32_0 : i32, i32
  }
  func.func @transform_3(%arg0: i32) -> (i32, i32) {
    %c0_i32 = arith.constant 0 : i32
    %c0_i32_0 = arith.constant 0 : i32
    %c0_i32_1 = arith.constant 0 : i32
    return %c0_i32, %c0_i32_0 : i32, i32
  }
  func.func @transform_4(%arg0: i32) -> (i32, i32) {
    %c0_i32 = arith.constant 0 : i32
    %c0_i32_0 = arith.constant 0 : i32
    %c0_i32_1 = arith.constant 0 : i32
    return %c0_i32, %c0_i32_0 : i32, i32
  }
  func.func @transform_5(%arg0: i32) -> (i32, i32) {
    %c0_i32 = arith.constant 0 : i32
    %c0_i32_0 = arith.constant 0 : i32
    return %arg0, %c0_i32 : i32, i32
  }
}

</mosaic_0001>

<bundles_post_ra>
// kernel: asl_network_forward.1
= control target key start
LH: loop header
LB: loop body
LE: loop exit
PB: predicated region body
PF: predicated region fallthrough
CT: control target
= control target key end

     0   :  { %s945_s18 = smov 0   ;;  %s1109_s0 = inlined_call_operand.vmem [shape: f32[256,64], index: 0, kind: input, shape index: {}]   ;;  %s1110_s1 = inlined_call_operand.vmem [shape: f32[64,128], index: 1, kind: input, shape index: {}]   ;;  %s1111_s2 = inlined_call_operand.vmem [shape: f32[1,128], index: 2, kind: input, shape index: {}]   ;;  %s1112_s3 = inlined_call_operand.vmem [shape: f32[128,128], index: 3, kind: input, shape index: {}]   ;;  %s1113_s4 = inlined_call_operand.vmem [shape: f32[1,128], index: 4, kind: input, shape index: {}]   ;;  %s1114_s5 = inlined_call_operand.vmem [shape: f32[256,128], index: 5, kind: output, shape index: {}]  }
   0x1 LB: > { %s698_s19 = sadd.s32 4294967295, %s913_s18   ;;  %p702_p0 = scmp.ge.s32.totalorder %s913_s18, 1  ;;  %s913_s18 = sphi %s945_s18, %s15_s18  }
   0x2   : > { %p188_p1 = scmp.lt.s32.totalorder %s913_s18, 3 }
   0x4   : > { %p189_p2 = pnand %p702_p0, %p188_p1 }
   0x5   : > { %s703_s26 = sshll.u32 (!%p189_p2), %s698_s19, 4 }
   0x6   : > { %192 = sbr.rel (%p189_p2) target bundleno = 493 (0x1ed), region = 40  ;;  %p217_p3 = scmp.lt.s32.totalorder (!%p189_p2), %s703_s26, 31 }
   0xb   : > { %v259_v0 = vld [vmem:[%s1110_s1 + $0x30] sm:$0xff]  ;;  %v260_v1 = vld [vmem:[%s1110_s1 + $0x38] sm:$0xff]  ;;  %v257_v2 = vld [vmem:[%s1110_s1 + $0x20] sm:$0xff]  ;;  %s1116_s26 = smov (!%p217_p3, %s703_s26), 31  ;;  %vm272_vm0 = vcmask 523264  }
   0xc   : > { %v264_v3 = vpack.c.bf16 %v260_v1, %v259_v0  ;;  %v258_v4 = vld [vmem:[%s1110_s1 + $0x28] sm:$0xff]  ;;  %v255_v6 = vld [vmem:[%s1110_s1 + $0x10] sm:$0xff]  ;;  %v256_v7 = vld [vmem:[%s1110_s1 + $0x18] sm:$0xff]  ;;  %s704_s8 = sshll.u32 %s1116_s26, 3 }
   0xd   : > { %v263_v5 = vpack.c.bf16 %v258_v4, %v257_v2  ;;  %v262_v8 = vpack.c.bf16 %v256_v7, %v255_v6  ;;  %v253_v9 = vld [vmem:[%s1110_s1] sm:$0xff]  ;;  %v254_v10 = vld [vmem:[%s1110_s1 + $0x8] sm:$0xff]  ;;  %s985_s15 = scalar_lea.vmem %s1109_s0, %s704_s8  ;;  %v512_v36 = vld [vmem:[%s1112_s3 + $0x70] sm:$0xff]  ;;  %s1088_s10 = scalar_lea.vmem %s1114_s5, %s704_s8 }
   0xe   : > { %763 = vmatprep.subr.bf16.mxu0 %v264_v3  ;;  %v229_v11 = vld [vmem:[%s985_s15] sm:$0xff]  ;;  %v230_v12 = vld [vmem:[%s985_s15 + $0x8] sm:$0xff]  ;;  %v261_v14 = vpack.c.bf16 %v254_v10, %v253_v9  ;;  %v231_v15 = vld [vmem:[%s985_s15 + $0x10] sm:$0xff] }
   0xf   : > { %764 = vmatpush3.bf16.msra.mxu0 %v264_v3  ;;  %v245_v13 = vpack.c.bf16 %v230_v12, %v229_v11  ;;  %v232_v16 = vld [vmem:[%s985_s15 + $0x18] sm:$0xff]  ;;  %v233_v17 = vld [vmem:[%s985_s15 + $0x20] sm:$0xff]  ;;  %v234_v18 = vld [vmem:[%s985_s15 + $0x28] sm:$0xff] }
  0x10   : > { %765 = vmatprep.subr.bf16.mxu0 %v263_v5  ;;  %v246_v19 = vpack.c.bf16 %v232_v16, %v231_v15  ;;  %v247_v20 = vpack.c.bf16 %v234_v18, %v233_v17  ;;  %v235_v21 = vld [vmem:[%s985_s15 + $0x30] sm:$0xff]  ;;  %v236_v22 = vld [vmem:[%s985_s15 + $0x38] sm:$0xff]  ;;  %v237_v23 = vld [vmem:[%s985_s15 + $0x40] sm:$0xff] }
  0x11   : > { %771 = vmatprep.mubr.msk.bf16.mxu0 %vm272_vm0, %v245_v13  ;;  %v238_v24 = vld [vmem:[%s985_s15 + $0x48] sm:$0xff]  ;;  %v248_v25 = vpack.c.bf16 %v236_v22, %v235_v21  ;;  %v239_v27 = vld [vmem:[%s985_s15 + $0x50] sm:$0xff]  ;;  %v240_v28 = vld [vmem:[%s985_s15 + $0x58] sm:$0xff] }
  0x12   : > { %v249_v26 = vpack.c.bf16 %v238_v24, %v237_v23  ;;  %v241_v29 = vld [vmem:[%s985_s15 + $0x60] sm:$0xff]  ;;  %v242_v30 = vld [vmem:[%s985_s15 + $0x68] sm:$0xff]  ;;  %v250_v31 = vpack.c.bf16 %v240_v28, %v239_v27  ;;  %v243_v33 = vld [vmem:[%s985_s15 + $0x70] sm:$0xff] }
  0x13   : > { %766 = vmatpush3.bf16.msra.mxu0 %v263_v5  ;;  %v251_v32 = vpack.c.bf16 %v242_v30, %v241_v29  ;;  %v244_v34 = vld [vmem:[%s985_s15 + $0x78] sm:$0xff]  ;;  %v510_v39 = vld [vmem:[%s1112_s3 + $0x60] sm:$0xff]  ;;  %v511_v40 = vld [vmem:[%s1112_s3 + $0x68] sm:$0xff] }
  0x14   : > { %767 = vmatprep.subr.bf16.mxu0 %v262_v8  ;;  %v252_v35 = vpack.c.bf16 %v244_v34, %v243_v33  ;;  %v513_v37 = vld [vmem:[%s1112_s3 + $0x78] sm:$0xff]  ;;  %v520_v41 = vpack.c.bf16 %v511_v40, %v510_v39  ;;  %v508_v42 = vld [vmem:[%s1112_s3 + $0x50] sm:$0xff]  ;;  %v506_v45 = vld [vmem:[%s1112_s3 + $0x40] sm:$0xff] }
  0x15   : > { %v521_v38 = vpack.c.bf16 %v513_v37, %v512_v36  ;;  %v509_v43 = vld [vmem:[%s1112_s3 + $0x58] sm:$0xff]  ;;  %v507_v46 = vld [vmem:[%s1112_s3 + $0x48] sm:$0xff]  ;;  %v504_v48 = vld [vmem:[%s1112_s3 + $0x30] sm:$0xff] }
  0x16   : > { %v519_v44 = vpack.c.bf16 %v509_v43, %v508_v42  ;;  %v518_v47 = vpack.c.bf16 %v507_v46, %v506_v45  ;;  %v505_v49 = vld [vmem:[%s1112_s3 + $0x38] sm:$0xff]  ;;  %v502_v51 = vld [vmem:[%s1112_s3 + $0x20] sm:$0xff]  ;;  %v503_v52 = vld [vmem:[%s1112_s3 + $0x28] sm:$0xff] }
  0x17   : > { %768 = vmatpush3.bf16.msra.mxu0 %v262_v8  ;;  %819 = vmatprep.subr.bf16.mxu1 %v521_v38  ;;  %v517_v50 = vpack.c.bf16 %v505_v49, %v504_v48  ;;  %v516_v53 = vpack.c.bf16 %v503_v52, %v502_v51  ;;  %v500_v54 = vld [vmem:[%s1112_s3 + $0x10] sm:$0xff]  ;;  %v501_v55 = vld [vmem:[%s1112_s3 + $0x18] sm:$0xff]  ;;  %v498_v57 = vld [vmem:[%s1112_s3] sm:$0xff] }
  0x18   : > { %769 = vmatprep.subr.bf16.mxu0 %v261_v14  ;;  %827 = vmatpush3.bf16.msra.mxu1 %v521_v38  ;;  %v515_v56 = vpack.c.bf16 %v501_v55, %v500_v54  ;;  %v499_v58 = vld [vmem:[%s1112_s3 + $0x8] sm:$0xff]  ;;  %v1062_v60 = vld [vmem:[%s1111_s2] ss:$0 sm:$0xff] }
  0x19   : > { %820 = vmatprep.subr.bf16.mxu1 %v520_v41  ;;  %v514_v59 = vpack.c.bf16 %v499_v58, %v498_v57 }
  0x1b   : > { %770 = vmatpush3.bf16.msra.mxu0 %v261_v14 }
  0x1c   : > { %787 = vmatprep.subr.bf16.mxu0 %v521_v38  ;;  %828 = vmatpush3.bf16.msra.mxu1 %v520_v41 }
  0x1d   : > { %821 = vmatprep.subr.bf16.mxu1 %v519_v44 }
  0x1e   : > { %772 = vmatmul.mubr.msk.bf16.vlgmr.msra.gmra.mxu0 %vm272_vm0, %v246_v19 }
  0x1f   : > { %775 = vmatprep.mubr.msk.bf16.mxu0 %vm272_vm0, %v247_v20  ;;  %788 = vmatpush3.bf16.msra.mxu0 %v521_v38 }
  0x20   : > { %789 = vmatprep.subr.bf16.mxu0 %v520_v41  ;;  %829 = vmatpush3.bf16.msra.mxu1 %v519_v44 }
  0x21   : > { %822 = vmatprep.subr.bf16.mxu1 %v518_v47 }
  0x23   : > { %790 = vmatpush3.bf16.msra.mxu0 %v520_v41 }
  0x24   : > { %791 = vmatprep.subr.bf16.mxu0 %v519_v44  ;;  %830 = vmatpush3.bf16.msra.mxu1 %v518_v47 }
  0x25   : > { %823 = vmatprep.subr.bf16.mxu1 %v517_v50 }
  0x26   : > { %776 = vmatmul.mubr.msk.bf16.gmra.mxu0 %vm272_vm0, %v248_v25 }
  0x27   : > { %779 = vmatprep.mubr.msk.bf16.mxu0 %vm272_vm0, %v249_v26  ;;  %792 = vmatpush3.bf16.msra.mxu0 %v519_v44 }
  0x28   : > { %793 = vmatprep.subr.bf16.mxu0 %v518_v47  ;;  %831 = vmatpush3.bf16.msra.mxu1 %v517_v50 }
  0x29   : > { %824 = vmatprep.subr.bf16.mxu1 %v516_v53 }
  0x2b   : > { %794 = vmatpush3.bf16.msra.mxu0 %v518_v47 }
  0x2c   : > { %795 = vmatprep.subr.bf16.mxu0 %v517_v50  ;;  %832 = vmatpush3.bf16.msra.mxu1 %v516_v53 }
  0x2d   : > { %825 = vmatprep.subr.bf16.mxu1 %v515_v56 }
  0x2e   : > { %780 = vmatmul.mubr.msk.bf16.gmra.mxu0 %vm272_vm0, %v250_v31 }
  0x2f   : > { %783 = vmatprep.mubr.msk.bf16.mxu0 %vm272_vm0, %v251_v32  ;;  %796 = vmatpush3.bf16.msra.mxu0 %v517_v50 }
  0x30   : > { %797 = vmatprep.subr.bf16.mxu0 %v516_v53  ;;  %833 = vmatpush3.bf16.msra.mxu1 %v515_v56 }
  0x31   : > { %826 = vmatprep.subr.bf16.mxu1 %v514_v59 }
  0x33   : > { %798 = vmatpush3.bf16.msra.mxu0 %v516_v53 }
  0x34   : > { %799 = vmatprep.subr.bf16.mxu0 %v515_v56  ;;  %834 = vmatpush3.bf16.msra.mxu1 %v514_v59 }
  0x36   : > { %784 = vmatmul.mubr.msk.bf16.gmra.mxu0 %vm272_vm0, %v252_v35 }
  0x37   : > { %800 = vmatpush3.bf16.msra.mxu0 %v515_v56 }
  0x38   : > { %801 = vmatprep.subr.bf16.mxu0 %v514_v59 }
  0x3b   : > { %802 = vmatpush3.bf16.msra.mxu0 %v514_v59 }
  0xde   : > { %v773_v61 = vpop.f32.mrf.mxu0 }
  0xdf   : > { %v340_v62 = vadd.f32 %v773_v61, %v1062_v60 }
  0xe0   : > { %v331_v63 = vpop.f32.mrf.mxu0 }
  0xe1   : > { %v718_v0 = vmul.f32 -1.442695, %v340_v62  ;;  %v332_v1 = vadd.f32 %v1062_v60, %v331_v63 }
  0xe2   : > { %v774_v2 = vpop.f32.mrf.mxu0 }
  0xe3   : > { %843 = vpow2.f32 %v718_v0  ;;  %v716_v3 = vmul.f32 -1.442695, %v332_v1  ;;  %v343_v4 = vadd.f32 %v774_v2, %v1062_v60 }
  0xe4   : > { %v334_v5 = vpop.f32.mrf.mxu0 }
  0xe5   : > { %845 = vpow2.f32 %v716_v3  ;;  %v719_v6 = vmul.f32 -1.442695, %v343_v4  ;;  %v335_v7 = vadd.f32 %v1062_v60, %v334_v5 }
  0xe6   : > { %v777_v8 = vpop.f32.mrf.mxu0 }
  0xe7   : > { %847 = vpow2.f32 %v719_v6  ;;  %v717_v9 = vmul.f32 -1.442695, %v335_v7  ;;  %v356_v10 = vadd.f32 %v777_v8, %v1062_v60 }
  0xe8   : > { %v347_v11 = vpop.f32.mrf.mxu0 }
  0xe9   : > { %849 = vpow2.f32 %v717_v9  ;;  %v722_v12 = vmul.f32 -1.442695, %v356_v10  ;;  %v348_v13 = vadd.f32 %v1062_v60, %v347_v11 }
  0xea   : > { %v778_v14 = vpop.f32.mrf.mxu0 }
  0xeb   : > { %851 = vpow2.f32 %v722_v12  ;;  %v720_v15 = vmul.f32 -1.442695, %v348_v13  ;;  %v359_v16 = vadd.f32 %v778_v14, %v1062_v60 }
  0xec   : > { %v350_v17 = vpop.f32.mrf.mxu0 }
  0xed   : > { %853 = vpow2.f32 %v720_v15  ;;  %v723_v18 = vmul.f32 -1.442695, %v359_v16  ;;  %v351_v19 = vadd.f32 %v1062_v60, %v350_v17 }
  0xee   : > { %v781_v20 = vpop.f32.mrf.mxu0 }
  0xef   : > { %855 = vpow2.f32 %v723_v18  ;;  %v721_v21 = vmul.f32 -1.442695, %v351_v19  ;;  %v372_v22 = vadd.f32 %v781_v20, %v1062_v60 }
  0xf0   : > { %v844_v23 = vpop.eup %843  ;;  %v363_v24 = vpop.f32.mrf.mxu0 }
  0xf1   : > { %v444_v25 = vadd.f32 1.0, %v844_v23  ;;  %857 = vpow2.f32 %v721_v21  ;;  %v726_v26 = vmul.f32 -1.442695, %v372_v22  ;;  %v364_v27 = vadd.f32 %v1062_v60, %v363_v24 }
  0xf2   : > { %v846_v28 = vpop.eup %845  ;;  %v782_v29 = vpop.f32.mrf.mxu0 }
  0xf3   : > { %859 = vrcp.f32 %v444_v25  ;;  %v442_v30 = vadd.f32 1.0, %v846_v28  ;;  %v724_v31 = vmul.f32 -1.442695, %v364_v27  ;;  %v375_v32 = vadd.f32 %v782_v29, %v1062_v60 }
  0xf4   : > { %v848_v33 = vpop.eup %847  ;;  %861 = vpow2.f32 %v726_v26  ;;  %v366_v34 = vpop.f32.mrf.mxu0 }
  0xf5   : > { %863 = vrcp.f32 %v442_v30  ;;  %v445_v35 = vadd.f32 1.0, %v848_v33  ;;  %v727_v36 = vmul.f32 -1.442695, %v375_v32  ;;  %v367_v37 = vadd.f32 %v1062_v60, %v366_v34 }
  0xf6   : > { %v850_v38 = vpop.eup %849  ;;  %865 = vpow2.f32 %v724_v31  ;;  %v785_v39 = vpop.f32.mrf.mxu0 }
  0xf7   : > { %867 = vrcp.f32 %v445_v35  ;;  %v443_v40 = vadd.f32 1.0, %v850_v38  ;;  %v725_v41 = vmul.f32 -1.442695, %v367_v37  ;;  %v388_v42 = vadd.f32 %v785_v39, %v1062_v60  ;;  %v732_v37 = vld [vmem:[%s1113_s4] ss:$0 sm:$0xff] }
  0xf8   : > { %v852_v43 = vpop.eup %851  ;;  %869 = vpow2.f32 %v727_v36  ;;  %v379_v44 = vpop.f32.mrf.mxu0 }
  0xf9   : > { %871 = vrcp.f32 %v443_v40  ;;  %v448_v45 = vadd.f32 1.0, %v852_v43  ;;  %v730_v46 = vmul.f32 -1.442695, %v388_v42  ;;  %v380_v47 = vadd.f32 %v1062_v60, %v379_v44 }
  0xfa   : > { %v854_v48 = vpop.eup %853  ;;  %873 = vpow2.f32 %v725_v41  ;;  %v786_v49 = vpop.f32.mrf.mxu0 }
  0xfb   : > { %875 = vrcp.f32 %v448_v45  ;;  %v446_v50 = vadd.f32 1.0, %v854_v48  ;;  %v728_v51 = vmul.f32 -1.442695, %v380_v47  ;;  %v391_v52 = vadd.f32 %v786_v49, %v1062_v60 }
  0xfc   : > { %v856_v53 = vpop.eup %855  ;;  %877 = vpow2.f32 %v730_v46  ;;  %v382_v54 = vpop.f32.mrf.mxu0 }
  0xfd   : > { %879 = vrcp.f32 %v446_v50  ;;  %v449_v55 = vadd.f32 1.0, %v856_v53  ;;  %v731_v56 = vmul.f32 -1.442695, %v391_v52  ;;  %v383_v57 = vadd.f32 %v1062_v60, %v382_v54 }
  0xfe   : > { %v858_v58 = vpop.eup %857  ;;  %881 = vpow2.f32 %v728_v51 }
  0xff   : > { %883 = vrcp.f32 %v449_v55  ;;  %v447_v59 = vadd.f32 1.0, %v858_v58  ;;  %v729_v61 = vmul.f32 -1.442695, %v383_v57 }
 0x100   : > { %v860_v62 = vpop.eup %859  ;;  %885 = vpow2.f32 %v731_v56 }
 0x101   : > { %v862_v63 = vpop.eup %861  ;;  %887 = vrcp.f32 %v447_v59 }
 0x102   : > { %v864_v0 = vpop.eup %863  ;;  %889 = vpow2.f32 %v729_v61  ;;  %v452_v8 = vadd.f32 1.0, %v862_v63 }
 0x103   : > { %v866_v1 = vpop.eup %865 }
 0x104   : > { %v868_v2 = vpop.eup %867  ;;  %v450_v3 = vadd.f32 1.0, %v866_v1 }
 0x105   : > { %v870_v4 = vpop.eup %869  ;;  %v491_v11 = vpack.c.bf16 %v868_v2, %v860_v62 }
 0x106   : > { %v872_v5 = vpop.eup %871  ;;  %v453_v6 = vadd.f32 1.0, %v870_v4  ;;  %891 = vrcp.f32 %v450_v3 }
 0x107   : > { %v874_v7 = vpop.eup %873  ;;  %v490_v60 = vpack.c.bf16 %v872_v5, %v864_v0 }
 0x108   : > { %v876_v9 = vpop.eup %875  ;;  %v451_v10 = vadd.f32 1.0, %v874_v7  ;;  %893 = vrcp.f32 %v453_v6 }
 0x109   : > { %v878_v12 = vpop.eup %877  ;;  %803 = vmatprep.mubr.bf16.mxu0 %v490_v60 }
 0x10a   : > { %v880_v13 = vpop.eup %879  ;;  %895 = vrcp.f32 %v451_v10  ;;  %804 = vmatmul.mubr.bf16.vlgmr.msra.gmra.mxu0 %v491_v11  ;;  %v456_v21 = vadd.f32 1.0, %v878_v12 }
 0x10b   : > { %v882_v14 = vpop.eup %881  ;;  %897 = vrcp.f32 %v452_v8 }
 0x10c   : > { %v884_v15 = vpop.eup %883  ;;  %v454_v16 = vadd.f32 1.0, %v882_v14 }
 0x10d   : > { %v886_v17 = vpop.eup %885  ;;  %v493_v24 = vpack.c.bf16 %v884_v15, %v876_v9 }
 0x10e   : > { %v888_v18 = vpop.eup %887  ;;  %v457_v19 = vadd.f32 1.0, %v886_v17  ;;  %899 = vrcp.f32 %v454_v16 }
 0x10f   : > { %v890_v20 = vpop.eup %889  ;;  %v492_v22 = vpack.c.bf16 %v888_v18, %v880_v13 }
 0x110   : > { %v455_v23 = vadd.f32 1.0, %v890_v20  ;;  %901 = vrcp.f32 %v457_v19 }
 0x111   : > { %807 = vmatprep.mubr.bf16.mxu1 %v492_v22 }
 0x112   : > { %903 = vrcp.f32 %v455_v23  ;;  %808 = vmatmul.mubr.bf16.vlgmr.msra.gmra.mxu1 %v493_v24 }
 0x113   : > { %905 = vrcp.f32 %v456_v21  ;;  %v892_v25 = vpop.eup %891 }
 0x115   : > { %v894_v26 = vpop.eup %893 }
 0x117   : > { %v896_v27 = vpop.eup %895 }
 0x118   : > { %v898_v28 = vpop.eup %897  ;;  %v494_v29 = vpack.c.bf16 %v896_v27, %v892_v25 }
 0x119   : > { %v495_v30 = vpack.c.bf16 %v894_v26, %v898_v28 }
 0x11a   : > { %811 = vmatprep.mubr.bf16.mxu1 %v494_v29 }
 0x11b   : > { %812 = vmatmul.mubr.bf16.gmra.mxu1 %v495_v30  ;;  %v900_v31 = vpop.eup %899 }
 0x11d   : > { %v902_v32 = vpop.eup %901 }
 0x11f   : > { %v904_v33 = vpop.eup %903 }
 0x120   : > { %v906_v34 = vpop.eup %905  ;;  %v496_v35 = vpack.c.bf16 %v904_v33, %v900_v31 }
 0x121   : > { %v497_v36 = vpack.c.bf16 %v902_v32, %v906_v34 }
 0x122   : > { %815 = vmatprep.mubr.bf16.mxu1 %v496_v35 }
 0x123   : > { %816 = vmatmul.mubr.bf16.gmra.mxu1 %v497_v36 }
 0x1ca   : > { %v805_v38 = vpop.f32.mrf.mxu0 }
 0x1cb   : > { %v572_v39 = vadd.f32 %v805_v38, %v732_v37 }
 0x1cc   : > { %v563_v40 = vpop.f32.mrf.mxu0 }
 0x1cd   : > { %628 = vst [vmem:[%s1088_s10 + $0x10] sm:$0xff] %v572_v39  ;;  %v564_v41 = vadd.f32 %v732_v37, %v563_v40 }
 0x1ce   : > { %v806_v42 = vpop.f32.mrf.mxu0 }
 0x1cf   : > { %626 = vst [vmem:[%s1088_s10] sm:$0xff] %v564_v41  ;;  %v575_v43 = vadd.f32 %v806_v42, %v732_v37 }
 0x1d0   : > { %v566_v44 = vpop.f32.mrf.mxu0 }
 0x1d1   : > { %629 = vst [vmem:[%s1088_s10 + $0x18] sm:$0xff] %v575_v43  ;;  %v567_v45 = vadd.f32 %v732_v37, %v566_v44 }
 0x1d2   : > { %v809_v46 = vpop.f32.mrf.mxu1 }
 0x1d3   : > { %627 = vst [vmem:[%s1088_s10 + $0x8] sm:$0xff] %v567_v45  ;;  %v588_v47 = vadd.f32 %v809_v46, %v732_v37 }
 0x1d4   : > { %v579_v48 = vpop.f32.mrf.mxu1 }
 0x1d5   : > { %632 = vst [vmem:[%s1088_s10 + $0x30] sm:$0xff] %v588_v47  ;;  %v580_v49 = vadd.f32 %v732_v37, %v579_v48 }
 0x1d6   : > { %v810_v50 = vpop.f32.mrf.mxu1 }
 0x1d7   : > { %630 = vst [vmem:[%s1088_s10 + $0x20] sm:$0xff] %v580_v49  ;;  %v591_v51 = vadd.f32 %v810_v50, %v732_v37 }
 0x1d8   : > { %v582_v52 = vpop.f32.mrf.mxu1 }
 0x1d9   : > { %633 = vst [vmem:[%s1088_s10 + $0x38] sm:$0xff] %v591_v51  ;;  %v583_v53 = vadd.f32 %v732_v37, %v582_v52 }
 0x1db   : > { %631 = vst [vmem:[%s1088_s10 + $0x28] sm:$0xff] %v583_v53  ;;  %v813_v54 = vpop.f32.mrf.mxu1 }
 0x1dc   : > { %v604_v55 = vadd.f32 %v813_v54, %v732_v37 }
 0x1dd   : > { %v595_v56 = vpop.f32.mrf.mxu1 }
 0x1de   : > { %636 = vst [vmem:[%s1088_s10 + $0x50] sm:$0xff] %v604_v55  ;;  %v596_v57 = vadd.f32 %v732_v37, %v595_v56 }
 0x1df   : > { %v814_v58 = vpop.f32.mrf.mxu1 }
 0x1e0   : > { %634 = vst [vmem:[%s1088_s10 + $0x40] sm:$0xff] %v596_v57  ;;  %v607_v59 = vadd.f32 %v814_v58, %v732_v37 }
 0x1e1   : > { %v598_v61 = vpop.f32.mrf.mxu1 }
 0x1e2   : > { %637 = vst [vmem:[%s1088_s10 + $0x58] sm:$0xff] %v607_v59  ;;  %v599_v62 = vadd.f32 %v732_v37, %v598_v61 }
 0x1e3   : > { %v817_v63 = vpop.f32.mrf.mxu1 }
 0x1e4   : > { %635 = vst [vmem:[%s1088_s10 + $0x48] sm:$0xff] %v599_v62  ;;  %v620_v0 = vadd.f32 %v817_v63, %v732_v37 }
 0x1e5   : > { %v611_v1 = vpop.f32.mrf.mxu1 }
 0x1e6   : > { %640 = vst [vmem:[%s1088_s10 + $0x70] sm:$0xff] %v620_v0  ;;  %v612_v2 = vadd.f32 %v732_v37, %v611_v1 }
 0x1e7   : > { %v818_v3 = vpop.f32.mrf.mxu1 }
 0x1e8   : > { %638 = vst [vmem:[%s1088_s10 + $0x60] sm:$0xff] %v612_v2  ;;  %v623_v4 = vadd.f32 %v818_v3, %v732_v37 }
 0x1e9   : > { %v614_v5 = vpop.f32.mrf.mxu1 }
 0x1ea   : > { %641 = vst [vmem:[%s1088_s10 + $0x78] sm:$0xff] %v623_v4  ;;  %v615_v6 = vadd.f32 %v732_v37, %v614_v5 }
 0x1ec   : > { %639 = vst [vmem:[%s1088_s10 + $0x68] sm:$0xff] %v615_v6 }
 0x1ed PF: > { %s15_s18 = sadd.s32 1, %s913_s18  }
 0x1ee   : > { %p12_p4 = scmp.ge.s32.totalorder %s15_s18, 4  }
 0x1f0   :  { %14 = sbr.rel (!%p12_p4) target bundleno = 1 (0x1), region = 70 }

</bundles_post_ra>
